<compile_context>
chip_gen: v7x
topology: tpu7x:2x2x1
jax: 0.10.0
libtpu: 0.0.40
codegen_flags: <defaults>
</compile_context>

<pallas_src>
import jax
import jax.numpy as jnp
import numpy as np
from jax.experimental import pallas as pl
from jax.experimental.pallas import tpu as pltpu


def _round_up(x, m):
    return (x + m - 1) // m * m


# ----------------------------- Pallas kernel --------------------------------

def _mlp_kernel(x_ref, w1_ref, b1_ref, w2_ref, b2_ref, w3t_ref, b3_ref, o_ref):
    """Fused Linear->ReLU->Linear->ReLU->(row-reduce Linear)->sigmoid."""
    # Cast activations to the weights' storage dtype (bf16) on-chip so both
    # MXU operands run at full bf16 rate; accumulation stays f32.
    x = x_ref[...].astype(w1_ref.dtype)                               # (tm, Din)

    h1 = jnp.dot(x, w1_ref[...], preferred_element_type=jnp.float32)
    h1 = jnp.maximum(h1 + b1_ref[...], 0.0)                           # (tm, H1) f32

    h2 = jnp.dot(h1.astype(w2_ref.dtype), w2_ref[...],
                 preferred_element_type=jnp.float32)
    h2 = jnp.maximum(h2 + b2_ref[...], 0.0)                           # (tm, H2) f32

    # Final layer has out_dim == 1: VPU multiply + XLU lane-reduce instead of a
    # 128-padded MXU matmul, so no wide z / wide output is ever materialized.
    w3 = w3t_ref[...]                                                 # (1, H2) f32
    z = jnp.sum(h2 * w3, axis=-1, keepdims=True) + b3_ref[...]        # (tm, 1)

    # sigmoid: exp + reciprocal both go to the EUP slot (free under matmuls).
    o_ref[...] = pl.reciprocal(1.0 + jnp.exp(-z), approx=True).astype(o_ref.dtype)


# ------------------------------ param prep -----------------------------------

def prepare_mlp_params(params, compute_dtype=jnp.bfloat16):
    """One-time weight preparation (call at model init, NOT per forward).

    Casts the two matmul weights to the MXU compute dtype and lays the 1-wide
    final layer out as a (1, H2) row for the in-kernel VPU/XLU reduce.  No
    zero-padding is needed: full-array blocks satisfy the (8,128) rule by
    equality, and Mosaic handles lane padding in VMEM.
    """
    w1, b1 = params["w1"], params["b1"]
    w2, b2 = params["w2"], params["b2"]
    w3, b3 = params["w3"], params["b3"]
    assert w3.shape[1] == 1, "MLP head is defined with a single output unit"
    f32 = jnp.float32
    return {
        "w1": jnp.asarray(w1, compute_dtype),            # (Din, H1)
        "b1": jnp.asarray(b1, f32).reshape(1, -1),       # (1, H1)
        "w2": jnp.asarray(w2, compute_dtype),            # (H1, H2)
        "b2": jnp.asarray(b2, f32).reshape(1, -1),       # (1, H2)
        "w3t": jnp.asarray(w3, f32).T,                   # (1, H2)  kept f32 (VPU)
        "b3": jnp.asarray(b3, f32).reshape(1, 1),        # (1, 1)
    }


# ------------------------------ wrapper --------------------------------------

def mlp_forward(hidden_states, prepared, *, block_m=512):
    """Forward pass of the MLP module (inference mode: dropout = identity).

    hidden_states: (..., input_dim).  Returns (..., 1) sigmoid outputs.
    `prepared` comes from prepare_mlp_params (cached device arrays).
    """
    w1, b1 = prepared["w1"], prepared["b1"]
    w2, b2 = prepared["w2"], prepared["b2"]
    w3t, b3 = prepared["w3t"], prepared["b3"]

    orig_shape = hidden_states.shape
    d_in = orig_shape[-1]
    assert d_in == w1.shape[0]
    H1 = w1.shape[1]
    H2 = w2.shape[1]

    x2 = hidden_states.reshape(-1, d_in)        # no cast, no feature padding
    M = x2.shape[0]

    # Row tile: multiple of 8 (sublane); default 512 = multiple of 256 (fills
    # the v6e/v7x MXU M dim) and of 128 (v5e).  Large M naturally gives >= 2
    # grid steps for the two v7x TensorCores; tiny M stays a single step.
    m8 = _round_up(max(M, 1), 8)
    tm = min(_round_up(block_m, 8), m8)
    Mp = _round_up(m8, tm)
    if Mp != M:
        x2 = jnp.pad(x2, ((0, Mp - M), (0, 0)))  # row padding only (small)

    # VMEM budget: resident weights/biases (double-buffered by default),
    # f32 intermediates, and double-buffered x / out tiles — with headroom.
    wbytes = (w1.size * w1.dtype.itemsize + w2.size * w2.dtype.itemsize
              + w3t.size * 4 + (H1 + H2 + 1) * 4)
    act_bytes = tm * (H1 + H2) * 4
    io_bytes = 2 * tm * d_in * x2.dtype.itemsize + 2 * tm * 4
    need = 2 * wbytes + act_bytes + io_bytes
    vmem_limit = int(min(max(2 * need, 32 * 1024 * 1024), 100 * 1024 * 1024))

    grid = (Mp // tm,)
    out = pl.pallas_call(
        _mlp_kernel,
        out_shape=jax.ShapeDtypeStruct((Mp, 1), hidden_states.dtype),
        grid_spec=pltpu.PrefetchScalarGridSpec(
            num_scalar_prefetch=0,
            grid=grid,
            in_specs=[
                pl.BlockSpec((tm, d_in), lambda i: (i, 0)),   # x row tile (unpadded features)
                pl.BlockSpec((d_in, H1), lambda i: (0, 0)),   # W1 (resident, constant idx)
                pl.BlockSpec((1, H1), lambda i: (0, 0)),      # b1
                pl.BlockSpec((H1, H2), lambda i: (0, 0)),     # W2 (resident)
                pl.BlockSpec((1, H2), lambda i: (0, 0)),      # b2
                pl.BlockSpec((1, H2), lambda i: (0, 0)),      # W3^T row (f32)
                pl.BlockSpec((1, 1), lambda i: (0, 0)),       # b3
            ],
            out_specs=pl.BlockSpec((tm, 1), lambda i: (i, 0)),  # true-width output
        ),
        compiler_params=pltpu.CompilerParams(
            dimension_semantics=("parallel",),
            vmem_limit_bytes=vmem_limit,
        ),
    )(x2, w1, b1, w2, b2, w3t, b3)

    return out[:M].reshape(*orig_shape[:-1], 1)


# ------------------------------ reference ------------------------------------

def mlp_reference(hidden_states, params):
    x = hidden_states.astype(jnp.float32)
    h1 = jnp.maximum(x @ params["w1"] + params["b1"], 0.0)
    h2 = jnp.maximum(h1 @ params["w2"] + params["b2"], 0.0)
    z = h2 @ params["w3"] + params["b3"]
    return jax.nn.sigmoid(z)


# --------------------------------- main ---------------------------------------

if __name__ == "__main__":
    B, S = 2, 8
    INPUT_DIM, HIDDEN1, HIDDEN2 = 32, 64, 32

    key = jax.random.PRNGKey(0)
    kx, k1, k2, k3, kb1, kb2, kb3 = jax.random.split(key, 7)

    params = {
        "w1": jax.random.normal(k1, (INPUT_DIM, HIDDEN1), jnp.float32) * 0.05,
        "b1": jax.random.normal(kb1, (HIDDEN1,), jnp.float32) * 0.05,
        "w2": jax.random.normal(k2, (HIDDEN1, HIDDEN2), jnp.float32) * 0.05,
        "b2": jax.random.normal(kb2, (HIDDEN2,), jnp.float32) * 0.05,
        "w3": jax.random.normal(k3, (HIDDEN2, 1), jnp.float32) * 0.05,
        "b3": jax.random.normal(kb3, (1,), jnp.float32) * 0.05,
    }

    hidden_states = jax.random.normal(kx, (B, S, INPUT_DIM), jnp.float32)

    prepared = prepare_mlp_params(params)          # one-time (cached) prep
    out = mlp_forward(hidden_states, prepared)
    jax.block_until_ready(out)
    assert out.shape == (B, S, 1), out.shape

    ref = mlp_reference(hidden_states, params)
    np.testing.assert_allclose(np.asarray(out), np.asarray(ref),
                               rtol=2e-2, atol=2e-2)

    print("KERNEL_OK")
</pallas_src>

<mosaic_0001>
module attributes {stable_mosaic.version = 11 : i64} {
  func.func @_mlp_kernel(%arg0: i32, %arg1: memref<16x32xf32, #tpu.memory_space<vmem>>, %arg2: memref<32x64xbf16, #tpu.memory_space<vmem>>, %arg3: memref<1x64xf32, #tpu.memory_space<vmem>>, %arg4: memref<64x32xbf16, #tpu.memory_space<vmem>>, %arg5: memref<1x32xf32, #tpu.memory_space<vmem>>, %arg6: memref<1x32xf32, #tpu.memory_space<vmem>>, %arg7: memref<1x1xf32, #tpu.memory_space<vmem>>, %arg8: memref<16x1xf32, #tpu.memory_space<vmem>>) attributes {dimension_semantics = [#tpu.dimension_semantics<parallel>], iteration_bounds = array<i64: 1>, scalar_prefetch = 0 : i64, scratch_operands = 0 : i64, tpu.core_type = #tpu.core_type<tc>, window_params = [{transform_indices = @transform_0, window_bounds = array<i64: 16, 32>}, {pipeline_mode = #tpu.pipeline_mode<synchronous>, transform_indices = @transform_1, window_bounds = array<i64: 32, 64>}, {pipeline_mode = #tpu.pipeline_mode<synchronous>, transform_indices = @transform_2, window_bounds = array<i64: 1, 64>}, {pipeline_mode = #tpu.pipeline_mode<synchronous>, transform_indices = @transform_3, window_bounds = array<i64: 64, 32>}, {pipeline_mode = #tpu.pipeline_mode<synchronous>, transform_indices = @transform_4, window_bounds = array<i64: 1, 32>}, {pipeline_mode = #tpu.pipeline_mode<synchronous>, transform_indices = @transform_5, window_bounds = array<i64: 1, 32>}, {pipeline_mode = #tpu.pipeline_mode<synchronous>, transform_indices = @transform_6, window_bounds = array<i64: 1, 1>}, {transform_indices = @transform_7, window_bounds = array<i64: 16, 1>}]} {
    %c0 = arith.constant 0 : index
    %c0_0 = arith.constant 0 : index
    %0 = vector.load %arg1[%c0, %c0_0] : memref<16x32xf32, #tpu.memory_space<vmem>>, vector<16x32xf32>
    %1 = arith.truncf %0 : vector<16x32xf32> to vector<16x32xbf16>
    %c0_1 = arith.constant 0 : index
    %c0_2 = arith.constant 0 : index
    %2 = vector.load %arg2[%c0_1, %c0_2] : memref<32x64xbf16, #tpu.memory_space<vmem>>, vector<32x64xbf16>
    %cst = arith.constant dense<0.000000e+00> : vector<16x64xf32>
    %3 = tpu.matmul %1, %2, %cst {dimension_numbers = #tpu.dot_dimension_numbers<[1], [0], [0], [1], [0, 0, 1, 1], [], []>} : vector<16x32xbf16>, vector<32x64xbf16>, vector<16x64xf32> -> vector<16x64xf32>
    %c0_3 = arith.constant 0 : index
    %c0_4 = arith.constant 0 : index
    %4 = vector.load %arg3[%c0_3, %c0_4] : memref<1x64xf32, #tpu.memory_space<vmem>>, vector<1x64xf32>
    %5 = vector.broadcast %4 : vector<1x64xf32> to vector<16x64xf32>
    %6 = arith.addf %3, %5 : vector<16x64xf32>
    %cst_5 = arith.constant 0.000000e+00 : f32
    %7 = vector.broadcast %cst_5 : f32 to vector<16x64xf32>
    %8 = arith.maximumf %6, %7 : vector<16x64xf32>
    %9 = arith.truncf %8 : vector<16x64xf32> to vector<16x64xbf16>
    %c0_6 = arith.constant 0 : index
    %c0_7 = arith.constant 0 : index
    %10 = vector.load %arg4[%c0_6, %c0_7] : memref<64x32xbf16, #tpu.memory_space<vmem>>, vector<64x32xbf16>
    %cst_8 = arith.constant dense<0.000000e+00> : vector<16x32xf32>
    %11 = tpu.matmul %9, %10, %cst_8 {dimension_numbers = #tpu.dot_dimension_numbers<[1], [0], [0], [1], [0, 0, 1, 1], [], []>} : vector<16x64xbf16>, vector<64x32xbf16>, vector<16x32xf32> -> vector<16x32xf32>
    %c0_9 = arith.constant 0 : index
    %c0_10 = arith.constant 0 : index
    %12 = vector.load %arg5[%c0_9, %c0_10] : memref<1x32xf32, #tpu.memory_space<vmem>>, vector<1x32xf32>
    %13 = vector.broadcast %12 : vector<1x32xf32> to vector<16x32xf32>
    %14 = arith.addf %11, %13 : vector<16x32xf32>
    %cst_11 = arith.constant 0.000000e+00 : f32
    %15 = vector.broadcast %cst_11 : f32 to vector<16x32xf32>
    %16 = arith.maximumf %14, %15 : vector<16x32xf32>
    %c0_12 = arith.constant 0 : index
    %c0_13 = arith.constant 0 : index
    %17 = vector.load %arg6[%c0_12, %c0_13] : memref<1x32xf32, #tpu.memory_space<vmem>>, vector<1x32xf32>
    %18 = vector.broadcast %17 : vector<1x32xf32> to vector<16x32xf32>
    %19 = arith.mulf %16, %18 : vector<16x32xf32>
    %cst_14 = arith.constant dense<0.000000e+00> : vector<16xf32>
    %20 = vector.multi_reduction <add>, %19, %cst_14 [1] : vector<16x32xf32> to vector<16xf32>
    %21 = vector.shape_cast %20 : vector<16xf32> to vector<16x1xf32>
    %c0_15 = arith.constant 0 : index
    %c0_16 = arith.constant 0 : index
    %22 = vector.load %arg7[%c0_15, %c0_16] : memref<1x1xf32, #tpu.memory_space<vmem>>, vector<1x1xf32>
    %23 = vector.broadcast %22 : vector<1x1xf32> to vector<16x1xf32>
    %24 = arith.addf %21, %23 : vector<16x1xf32>
    %cst_17 = arith.constant 0.000000e+00 : f32
    %25 = vector.broadcast %cst_17 : f32 to vector<16x1xf32>
    %26 = arith.subf %25, %24 : vector<16x1xf32>
    %27 = math.exp %26 : vector<16x1xf32>
    %cst_18 = arith.constant 1.000000e+00 : f32
    %28 = vector.broadcast %cst_18 : f32 to vector<16x1xf32>
    %29 = arith.addf %28, %27 : vector<16x1xf32>
    %30 = tpu.reciprocal %29 {approx = true} : vector<16x1xf32> -> vector<16x1xf32>
    %c0_19 = arith.constant 0 : index
    %c0_20 = arith.constant 0 : index
    %31 = vector.load %arg8[%c0_19, %c0_20] : memref<16x1xf32, #tpu.memory_space<vmem>>, vector<16x1xf32>
    tpu.vector_store %arg8[%c0_19, %c0_20], %30 {strides = array<i32>} : memref<16x1xf32, #tpu.memory_space<vmem>>, vector<16x1xf32>,
    return
  }
  func.func @transform_0(%arg0: i32) -> (i32, i32) {
    %c0_i32 = arith.constant 0 : i32
    %c0_i32_0 = arith.constant 0 : i32
    return %arg0, %c0_i32 : i32, i32
  }
  func.func @transform_1(%arg0: i32) -> (i32, i32) {
    %c0_i32 = arith.constant 0 : i32
    %c0_i32_0 = arith.constant 0 : i32
    %c0_i32_1 = arith.constant 0 : i32
    return %c0_i32, %c0_i32_0 : i32, i32
  }
  func.func @transform_2(%arg0: i32) -> (i32, i32) {
    %c0_i32 = arith.constant 0 : i32
    %c0_i32_0 = arith.constant 0 : i32
    %c0_i32_1 = arith.constant 0 : i32
    return %c0_i32, %c0_i32_0 : i32, i32
  }
  func.func @transform_3(%arg0: i32) -> (i32, i32) {
    %c0_i32 = arith.constant 0 : i32
    %c0_i32_0 = arith.constant 0 : i32
    %c0_i32_1 = arith.constant 0 : i32
    return %c0_i32, %c0_i32_0 : i32, i32
  }
  func.func @transform_4(%arg0: i32) -> (i32, i32) {
    %c0_i32 = arith.constant 0 : i32
    %c0_i32_0 = arith.constant 0 : i32
    %c0_i32_1 = arith.constant 0 : i32
    return %c0_i32, %c0_i32_0 : i32, i32
  }
  func.func @transform_5(%arg0: i32) -> (i32, i32) {
    %c0_i32 = arith.constant 0 : i32
    %c0_i32_0 = arith.constant 0 : i32
    %c0_i32_1 = arith.constant 0 : i32
    return %c0_i32, %c0_i32_0 : i32, i32
  }
  func.func @transform_6(%arg0: i32) -> (i32, i32) {
    %c0_i32 = arith.constant 0 : i32
    %c0_i32_0 = arith.constant 0 : i32
    %c0_i32_1 = arith.constant 0 : i32
    return %c0_i32, %c0_i32_0 : i32, i32
  }
  func.func @transform_7(%arg0: i32) -> (i32, i32) {
    %c0_i32 = arith.constant 0 : i32
    %c0_i32_0 = arith.constant 0 : i32
    return %arg0, %c0_i32 : i32, i32
  }
}

</mosaic_0001>

<bundles_post_ra>
// kernel: tpu_custom_call.1
= control target key start
LH: loop header
LB: loop body
LE: loop exit
PB: predicated region body
PF: predicated region fallthrough
CT: control target
= control target key end

     0   :  { %v286_v0 = vmov 0.0   ;;  %vm287_vm0 = vmmov 0   ;;  %vm55_vm1 = vcmask 261120   ;;  %vm142_vm2 = vcmask 523264   ;;  %s373_s1 = inlined_call_operand.vmem [shape: bf16[32,64], index: 1, kind: input, shape index: {}]   ;;  %s374_s0 = inlined_call_operand.vmem [shape: f32[16,32], index: 0, kind: input, shape index: {}]   ;;  %s375_s3 = inlined_call_operand.vmem [shape: bf16[64,32], index: 3, kind: input, shape index: {}]   ;;  %s376_s2 = inlined_call_operand.vmem [shape: f32[1,64], index: 2, kind: input, shape index: {}]   ;;  %s377_s6 = inlined_call_operand.<no memory space> [shape: f32[1,1], index: 6, kind: input, shape index: {}]   ;;  %s378_s4 = inlined_call_operand.vmem [shape: f32[1,32], index: 4, kind: input, shape index: {}]   ;;  %s379_s5 = inlined_call_operand.vmem [shape: f32[1,32], index: 5, kind: input, shape index: {}]   ;;  %s380_s7 = inlined_call_operand.vmem [shape: f32[16,1], index: 7, kind: output, shape index: {}]  }
   0x1   :  { %250 = vmatprep.subr.bf16.mxu0 %v286_v0  ;;  %v272_v1 = vld [vmem:[%s373_s1] sm:$0xff]   ;;  %254 = vmatprep.mubr.msk.bf16.mxu0 %vm287_vm0, %v286_v0  ;;  %v273_v2 = vld [vmem:[%s373_s1 + $0x8] sm:$0xff]   ;;  %v276_v8 = vld [vmem:[%s375_s3 + $0x10] sm:$0xff]   ;;  %v12_v20 = vstv %s377_s6  ;;  %vm223_vm3 = vcmask 7168  }
   0x2   :  { %258 = vmatprep.subr.bf16.mxu1 %v286_v0  ;;  %266 = vmatprep.mubr.msk.bf16.mxu1 %vm287_vm0, %v286_v0  ;;  %v29_v3 = vld [vmem:[%s374_s0] sm:$0xff]  ;;  %v30_v4 = vld [vmem:[%s374_s0 + $0x8] sm:$0xff]  ;;  %v277_v9 = vld [vmem:[%s375_s3 + $0x18] sm:$0xff]   ;;  %13 = vst [vmem:[#allocation2] sm:$0x1] %v12_v20 }
   0x3   :  { %251 = vmatpush3.bf16.msra.mxu0 %v272_v1  ;;  %v274_v5 = vld [vmem:[%s375_s3] sm:$0xff]   ;;  %v275_v6 = vld [vmem:[%s375_s3 + $0x8] sm:$0xff]   ;;  %v31_v7 = vpack.c.bf16 %v30_v4, %v29_v3 }
   0x4   :  { %252 = vmatprep.subr.bf16.mxu0 %v286_v0  ;;  %259 = vmatpush3.bf16.msra.mxu1 %v274_v5  ;;  %v230_v10 = vld [vmem:[%s376_s2] ss:$0 sm:$0xff] }
   0x5   :  { %260 = vmatprep.subr.bf16.mxu1 %v286_v0  ;;  %v234_v21 = vld [vmem:[%s378_s4] ss:$0 sm:$0xff] }
   0x6   :  { %v240_v26 = vld [vmem:[%s379_s5] ss:$0 sm:$0xff] }
   0x7   :  { %253 = vmatpush3.bf16.msra.mxu0 %v273_v2 }
   0x8   :  { %261 = vmatpush3.bf16.msra.mxu1 %v275_v6 }
   0x9   :  { %262 = vmatprep.subr.bf16.mxu1 %v286_v0  ;;  %v241_v35 = vld [vmem:[#allocation2] ss:$0 sm:$0xff] }
   0xa   :  { %255 = vmatmul.mubr.msk.bf16.vlgmr.msra.gmra.mrb[0].mxu0 %vm55_vm1, %v31_v7 }
   0xc   :  { %263 = vmatpush3.bf16.msra.mxu1 %v276_v8 }
   0xd   :  { %264 = vmatprep.subr.bf16.mxu1 %v286_v0 }
  0x10   :  { %265 = vmatpush3.bf16.msra.mxu1 %v277_v9 }
  0xdd   :  { %v93_v11 = vpop.f32.mrb[0].mxu0 }
  0xde   :  { %v94_v12 = vadd.f32 %v230_v10, %v93_v11  ;;  %v256_v13 = vpop.f32.mrb[1].mxu0 }
  0xdf   :  { %v96_v14 = vpop.f32.mrb[2].mxu0 }
  0xe0   :  { %v97_v15 = vadd.f32 %v230_v10, %v96_v14  ;;  %v257_v16 = vpop.f32.mrb[3].mxu0  ;;  %v100_v17 = vmax.f32 %v94_v12, 0.0 }
  0xe2   :  { %v101_v18 = vmax.f32 %v97_v15, 0.0 }
  0xe4   :  { %v102_v19 = vpack.c.bf16 %v101_v18, %v100_v17 }
  0xe6   :  { %267 = vmatmul.mubr.msk.bf16.vlgmr.msra.gmra.mrb[0].mxu1 %vm142_vm2, %v102_v19 }
 0x1b9   :  { %v180_v22 = vpop.f32.mrb[0].mxu1 }
 0x1ba   :  { %v181_v23 = vadd.f32 %v234_v21, %v180_v22  ;;  %v268_v24 = vpop.f32.mrb[1].mxu1 }
 0x1bb   :  { %v183_v25 = vpop.f32.mrb[2].mxu1 }
 0x1bc   :  { %v187_v27 = vmax.f32 %v181_v23, 0.0  ;;  %v184_v28 = vadd.f32 %v234_v21, %v183_v25  ;;  %v269_v29 = vpop.f32.mrb[3].mxu1 }
 0x1be   :  { %v188_v30 = vmax.f32 %v184_v28, 0.0  ;;  %v196_v31 = vmul.f32 %v240_v26, %v187_v27 }
 0x1c0   :  { %v198_v32 = vsel %vm55_vm1, %v196_v31, 0.0  ;;  %v197_v33 = vmul.f32 %v240_v26, %v188_v30 }
 0x1c1   :  { %199 = vadd.xlane.f32.xlu0 %v198_v32 }
 0x1c2   :  { %v201_v34 = vsel %vm55_vm1, %v197_v33, 0.0 }
 0x1c5   :  { %202 = vadd.xlane.f32.xlu0 %v201_v34 }
 0x24e   :  { %v200_v36 = vpop.xlane.xlu0 %199 }
 0x24f   :  { %v211_v37 = vadd.f32 %v241_v35, %v200_v36 }
 0x251   :  { %v213_v38 = vsub.f32 0.0, %v211_v37 }
 0x252   :  { %v203_v39 = vpop.xlane.xlu0 %202 }
 0x253   :  { %v215_v40 = vmul.f32 1.442695, %v213_v38  ;;  %v212_v41 = vadd.f32 %v241_v35, %v203_v39 }
 0x255   :  { %278 = vpow2.f32 %v215_v40  ;;  %v214_v42 = vsub.f32 0.0, %v212_v41 }
 0x257   :  { %v217_v43 = vmul.f32 1.442695, %v214_v42 }
 0x259   :  { %280 = vpow2.f32 %v217_v43 }
 0x25f   :  { %v279_v44 = vpop.eup %278 }
 0x260   :  { %v219_v45 = vadd.f32 1.0, %v279_v44 }
 0x262   :  { %282 = vrcp.f32 %v219_v45 }
 0x263   :  { %v281_v46 = vpop.eup %280 }
 0x264   :  { %v220_v47 = vadd.f32 1.0, %v281_v46 }
 0x266   :  { %284 = vrcp.f32 %v220_v47 }
 0x26c   :  { %v283_v48 = vpop.eup %282 }
 0x26d   :  { %224 = vst.msk [vmem:[%s380_s7] sm:$0xff] %vm223_vm3, %v283_v48 }
 0x270   :  { %v285_v49 = vpop.eup %284 }
 0x271   :  { %225 = vst.msk [vmem:[%s380_s7 + $0x8] sm:$0xff] %vm223_vm3, %v285_v49 }

</bundles_post_ra>
